<compile_context>
chip_gen: v5e
topology: v5e:2x2
jax: 0.10.0
libtpu: 0.0.40
codegen_flags: <defaults>
</compile_context>

<pallas_src>
import jax
import jax.numpy as jnp
from jax.experimental import pallas as pl
from jax.experimental.pallas import tpu as pltpu

LANE = 128
SUBLANE = 8
NEG_INF = -1e30  # large negative filler for padded class rows (avoids NaN from true -inf)


def _round_up(x, m):
    return ((x + m - 1) // m) * m


def sentiment_kernel(x_ref, w1_ref, b1_ref, w2t_ref, b2_ref, o_ref):
    # x: (TB, F) bf16/f32, w1: (F, Hp) f32, b1: (1, Hp) f32,
    # w2t: (Cp, Hp) f32, b2: (Cp, 1) f32, o: (Cp, TB) f32
    x = x_ref[...].astype(jnp.float32)  # bf16 0/1 values upcast exactly

    # linear1 + relu; padded hidden lanes have zero weights + zero bias -> relu -> 0
    h = jnp.dot(x, w1_ref[...], preferred_element_type=jnp.float32) + b1_ref[...]
    h = jnp.maximum(h, 0.0)

    # linear2 produced directly in the transposed layout:
    #   logits[c, b] = sum_h w2t[c, h] * h[b, h]   -> (Cp, TB), lane-dense in batch
    logits = jax.lax.dot_general(
        w2t_ref[...], h,
        dimension_numbers=(((1,), (1,)), ((), ())),
        preferred_element_type=jnp.float32,
    ) + b2_ref[...]

    # log_softmax over the class (sublane) axis. Padded class rows carry a -1e30
    # bias so exp underflows to exactly 0 and the logsumexp matches the unpadded
    # result; only 8 sublanes are reduced (vs 128 lanes before).
    m = jnp.max(logits, axis=0, keepdims=True)
    shifted = logits - m
    lse = jnp.log(jnp.sum(jnp.exp(shifted), axis=0, keepdims=True))
    o_ref[...] = shifted - lse


def pad_params(w1, b1, w2, b2):
    """Pad/transpose parameters once; reuse the result across forward calls.

    w1: (F, H), b1: (H,), w2: (H, C), b2: (C,)  (already stored as (in, out)).
    Returns (w1p (F,Hp), b1p (1,Hp), w2t (Cp,Hp), b2p (Cp,1)) with Hp=128-mult,
    Cp=8-mult; padded hidden lanes are zero, padded class rows get a -1e30 bias.
    """
    F, H = w1.shape
    C = w2.shape[1]
    Hp = _round_up(H, LANE)
    Cp = _round_up(C, SUBLANE)

    w1p = jnp.zeros((F, Hp), jnp.float32).at[:, :H].set(w1.astype(jnp.float32))
    b1p = jnp.zeros((1, Hp), jnp.float32).at[:, :H].set(b1.astype(jnp.float32))
    w2t = jnp.zeros((Cp, Hp), jnp.float32).at[:C, :H].set(w2.T.astype(jnp.float32))
    b2p = jnp.full((Cp, 1), NEG_INF, jnp.float32).at[:C, :].set(
        b2.astype(jnp.float32).reshape(C, 1))
    return w1p, b1p, w2t, b2p


def _choose_tb(B, block_b):
    """Pick the batch tile: big tiles to amortize grid-step overhead, at least
    two tiles (v7x megacore) when that costs <=12.5% padded rows."""
    if B > block_b:
        return block_b                      # multiple of 128 by construction
    if B >= 256:
        tb2 = _round_up(pl.cdiv(B, 2), LANE)
        if 2 * tb2 - B <= B // 8:
            return tb2
    return _round_up(B, SUBLANE)            # single tile covering the whole batch


def sentiment_forward(x, padded_params, num_classes, *, block_b=2048):
    """x: (B, NUM_FEATURES) (bf16 recommended); padded_params from pad_params()."""
    w1p, b1p, w2t, b2p = padded_params
    B, F = x.shape
    Cp, Hp = w2t.shape

    TB = _choose_tb(B, block_b)
    grid_n = pl.cdiv(B, TB)
    Bp = grid_n * TB  # output lane extent; extra columns hold discarded ragged rows

    out = pl.pallas_call(
        sentiment_kernel,
        out_shape=jax.ShapeDtypeStruct((Cp, Bp), jnp.float32),
        grid=(grid_n,),
        in_specs=[
            pl.BlockSpec((TB, F), lambda i: (i, 0)),    # x streamed per batch tile
            pl.BlockSpec((F, Hp), lambda i: (0, 0)),    # weights resident in VMEM
            pl.BlockSpec((1, Hp), lambda i: (0, 0)),
            pl.BlockSpec((Cp, Hp), lambda i: (0, 0)),
            pl.BlockSpec((Cp, 1), lambda i: (0, 0)),
        ],
        out_specs=pl.BlockSpec((Cp, TB), lambda i: (0, i)),  # compact (8, TB) slab
        compiler_params=pltpu.CompilerParams(
            dimension_semantics=("parallel",),  # split batch tiles across TCs
        ),
    )(x, w1p, b1p, w2t, b2p)

    # (Cp, Bp) -> (B, C): drop padded class rows / ragged batch columns, transpose back
    return out[:num_classes, :B].T


def init_params(key, num_features, num_classes, hidden):
    """Deterministic init mimicking nn.Linear's uniform(-1/sqrt(fan_in), 1/sqrt(fan_in))."""
    k1, k2, k3, k4 = jax.random.split(key, 4)
    bound1 = 1.0 / jnp.sqrt(num_features)
    bound2 = 1.0 / jnp.sqrt(hidden)
    # stored already transposed: (in_features, out_features)
    w1 = jax.random.uniform(k1, (num_features, hidden), jnp.float32, -bound1, bound1)
    b1 = jax.random.uniform(k2, (hidden,), jnp.float32, -bound1, bound1)
    w2 = jax.random.uniform(k3, (hidden, num_classes), jnp.float32, -bound2, bound2)
    b2 = jax.random.uniform(k4, (num_classes,), jnp.float32, -bound2, bound2)
    return w1, b1, w2, b2


def reference_forward(x, w1, b1, w2, b2):
    xf = x.astype(jnp.float32)
    h = jnp.maximum(jnp.dot(xf, w1, precision=jax.lax.Precision.HIGHEST) + b1, 0.0)
    logits = jnp.dot(h, w2, precision=jax.lax.Precision.HIGHEST) + b2
    return jax.nn.log_softmax(logits, axis=1)


if __name__ == "__main__":
    NUM_FEATURES = 128   # one-hot vocab size
    NUM_CLASSES = 2      # positive / negative sentiment
    HIDDEN = 10          # PyTorch default HIDDEN=10
    BATCH = 8

    key = jax.random.PRNGKey(0)
    kx, kp = jax.random.split(key)

    # one-hot-ish bag-of-words features; 0/1 values are exact in bf16
    x = (jax.random.uniform(kx, (BATCH, NUM_FEATURES)) > 0.8).astype(jnp.bfloat16)
    w1, b1, w2, b2 = init_params(kp, NUM_FEATURES, NUM_CLASSES, HIDDEN)

    padded = pad_params(w1, b1, w2, b2)  # built once; cached across forward calls

    out = sentiment_forward(x, padded, NUM_CLASSES)
    out = jax.block_until_ready(out)

    ref = reference_forward(x, w1, b1, w2, b2)
    assert out.shape == (BATCH, NUM_CLASSES)
    assert jnp.allclose(out, ref, atol=1e-4, rtol=1e-4), "mismatch vs reference"

    # TODO(synk): for realistic vocabularies (F >> 128), K-tile over F with an
    # "arbitrary" reduction axis + VMEM accumulator (or pipeline_mode=pl.Buffered(1)
    # on the resident w1 spec) so the weight block fits v7x's 64 MiB VMEM.

    print("KERNEL_OK")
</pallas_src>

<mosaic_0001>
module attributes {stable_mosaic.version = 11 : i64} {
  func.func @sentiment_kernel(%arg0: i32, %arg1: memref<8x128xbf16, #tpu.memory_space<vmem>>, %arg2: memref<128x128xf32, #tpu.memory_space<vmem>>, %arg3: memref<1x128xf32, #tpu.memory_space<vmem>>, %arg4: memref<8x128xf32, #tpu.memory_space<vmem>>, %arg5: memref<8x1xf32, #tpu.memory_space<vmem>>, %arg6: memref<8x8xf32, #tpu.memory_space<vmem>>) attributes {dimension_semantics = [#tpu.dimension_semantics<parallel>], iteration_bounds = array<i64: 1>, scalar_prefetch = 0 : i64, scratch_operands = 0 : i64, tpu.core_type = #tpu.core_type<tc>, window_params = [{transform_indices = @transform_0, window_bounds = array<i64: 8, 128>}, {pipeline_mode = #tpu.pipeline_mode<synchronous>, transform_indices = @transform_1, window_bounds = array<i64: 128, 128>}, {pipeline_mode = #tpu.pipeline_mode<synchronous>, transform_indices = @transform_2, window_bounds = array<i64: 1, 128>}, {pipeline_mode = #tpu.pipeline_mode<synchronous>, transform_indices = @transform_3, window_bounds = array<i64: 8, 128>}, {pipeline_mode = #tpu.pipeline_mode<synchronous>, transform_indices = @transform_4, window_bounds = array<i64: 8, 1>}, {transform_indices = @transform_5, window_bounds = array<i64: 8, 8>}]} {
    %c0 = arith.constant 0 : index
    %c0_0 = arith.constant 0 : index
    %0 = vector.load %arg1[%c0, %c0_0] : memref<8x128xbf16, #tpu.memory_space<vmem>>, vector<8x128xbf16>
    %1 = arith.extf %0 : vector<8x128xbf16> to vector<8x128xf32>
    %c0_1 = arith.constant 0 : index
    %c0_2 = arith.constant 0 : index
    %2 = vector.load %arg2[%c0_1, %c0_2] : memref<128x128xf32, #tpu.memory_space<vmem>>, vector<128x128xf32>
    %cst = arith.constant dense<0.000000e+00> : vector<8x128xf32>
    %3 = tpu.matmul %1, %2, %cst {dimension_numbers = #tpu.dot_dimension_numbers<[1], [0], [0], [1], [0, 0, 1, 1], [], []>} : vector<8x128xf32>, vector<128x128xf32>, vector<8x128xf32> -> vector<8x128xf32>
    %c0_3 = arith.constant 0 : index
    %c0_4 = arith.constant 0 : index
    %4 = vector.load %arg3[%c0_3, %c0_4] : memref<1x128xf32, #tpu.memory_space<vmem>>, vector<1x128xf32>
    %5 = vector.broadcast %4 : vector<1x128xf32> to vector<8x128xf32>
    %6 = arith.addf %3, %5 : vector<8x128xf32>
    %cst_5 = arith.constant 0.000000e+00 : f32
    %7 = vector.broadcast %cst_5 : f32 to vector<8x128xf32>
    %8 = arith.maximumf %6, %7 : vector<8x128xf32>
    %c0_6 = arith.constant 0 : index
    %c0_7 = arith.constant 0 : index
    %9 = vector.load %arg4[%c0_6, %c0_7] : memref<8x128xf32, #tpu.memory_space<vmem>>, vector<8x128xf32>
    %cst_8 = arith.constant dense<0.000000e+00> : vector<8x8xf32>
    %10 = tpu.matmul %9, %8, %cst_8 {dimension_numbers = #tpu.dot_dimension_numbers<[1], [1], [0], [0], [0, 0, 1, 0], [], []>} : vector<8x128xf32>, vector<8x128xf32>, vector<8x8xf32> -> vector<8x8xf32>
    %c0_9 = arith.constant 0 : index
    %c0_10 = arith.constant 0 : index
    %11 = vector.load %arg5[%c0_9, %c0_10] : memref<8x1xf32, #tpu.memory_space<vmem>>, vector<8x1xf32>
    %12 = vector.broadcast %11 : vector<8x1xf32> to vector<8x8xf32>
    %13 = arith.addf %10, %12 : vector<8x8xf32>
    %cst_11 = arith.constant dense<0xFF800000> : vector<8xf32>
    %14 = vector.multi_reduction <maximumf>, %13, %cst_11 [0] : vector<8x8xf32> to vector<8xf32>
    %15 = vector.shape_cast %14 : vector<8xf32> to vector<1x8xf32>
    %16 = vector.broadcast %15 : vector<1x8xf32> to vector<8x8xf32>
    %17 = arith.subf %13, %16 : vector<8x8xf32>
    %18 = math.exp %17 : vector<8x8xf32>
    %cst_12 = arith.constant dense<0.000000e+00> : vector<8xf32>
    %19 = vector.multi_reduction <add>, %18, %cst_12 [0] : vector<8x8xf32> to vector<8xf32>
    %20 = vector.shape_cast %19 : vector<8xf32> to vector<1x8xf32>
    %21 = math.log %20 : vector<1x8xf32>
    %22 = vector.broadcast %21 : vector<1x8xf32> to vector<8x8xf32>
    %23 = arith.subf %17, %22 : vector<8x8xf32>
    %c0_13 = arith.constant 0 : index
    %c0_14 = arith.constant 0 : index
    %24 = vector.load %arg6[%c0_13, %c0_14] : memref<8x8xf32, #tpu.memory_space<vmem>>, vector<8x8xf32>
    tpu.vector_store %arg6[%c0_13, %c0_14], %23 {strides = array<i32>} : memref<8x8xf32, #tpu.memory_space<vmem>>, vector<8x8xf32>,
    return
  }
  func.func @transform_0(%arg0: i32) -> (i32, i32) {
    %c0_i32 = arith.constant 0 : i32
    %c0_i32_0 = arith.constant 0 : i32
    return %arg0, %c0_i32 : i32, i32
  }
  func.func @transform_1(%arg0: i32) -> (i32, i32) {
    %c0_i32 = arith.constant 0 : i32
    %c0_i32_0 = arith.constant 0 : i32
    %c0_i32_1 = arith.constant 0 : i32
    return %c0_i32, %c0_i32_0 : i32, i32
  }
  func.func @transform_2(%arg0: i32) -> (i32, i32) {
    %c0_i32 = arith.constant 0 : i32
    %c0_i32_0 = arith.constant 0 : i32
    %c0_i32_1 = arith.constant 0 : i32
    return %c0_i32, %c0_i32_0 : i32, i32
  }
  func.func @transform_3(%arg0: i32) -> (i32, i32) {
    %c0_i32 = arith.constant 0 : i32
    %c0_i32_0 = arith.constant 0 : i32
    %c0_i32_1 = arith.constant 0 : i32
    return %c0_i32, %c0_i32_0 : i32, i32
  }
  func.func @transform_4(%arg0: i32) -> (i32, i32) {
    %c0_i32 = arith.constant 0 : i32
    %c0_i32_0 = arith.constant 0 : i32
    %c0_i32_1 = arith.constant 0 : i32
    return %c0_i32, %c0_i32_0 : i32, i32
  }
  func.func @transform_5(%arg0: i32) -> (i32, i32) {
    %c0_i32 = arith.constant 0 : i32
    %c0_i32_0 = arith.constant 0 : i32
    return %c0_i32, %arg0 : i32, i32
  }
}

</mosaic_0001>

<bundles_post_ra>
// kernel: tpu_custom_call.1
= control target key start
LH: loop header
LB: loop body
LE: loop exit
PB: predicated region body
PF: predicated region fallthrough
CT: control target
= control target key end

     0   :  { %10 = vsyncpa [#allocation3], 0  ;;  %s308_s0 = inlined_call_operand.hbm [shape: bf16[8,128], index: 0, kind: input, shape index: {}]   ;;  %s309_s1 = inlined_call_operand.hbm [shape: f32[128,128], index: 1, kind: input, shape index: {}]   ;;  %s310_s2 = inlined_call_operand.vmem [shape: f32[1,128], index: 2, kind: input, shape index: {}]   ;;  %s311_s3 = inlined_call_operand.vmem [shape: f32[8,128], index: 3, kind: input, shape index: {}]   ;;  %s312_s4 = inlined_call_operand.vmem [shape: f32[8,1], index: 4, kind: input, shape index: {}]   ;;  %s313_s5 = inlined_call_operand.hbm [shape: f32[8,8], index: 5, kind: output, shape index: {}]  }
   0x1   :  { %11 = vsyncpa [#allocation6], 0 }
   0x2   :  { %12 = vsyncpa [#allocation4], 0  ;;  %s18_s20 = sshll.u32 %s308_s0, 4  ;;  %s251_s21 = smov [#allocation2]   ;;  %s19_s20 = int_to_ptr.hbm [resolvable:$true] %s18_s20 }
   0x3   :  { %s20_s22 = sshll.u32 %s251_s21, 4  ;;  %s28_s25 = sshll.u32 %s309_s1, 4  ;;  %s21_s22 = int_to_ptr.vmem [resolvable:$true] %s20_s22  ;;  %s29_s25 = int_to_ptr.hbm [resolvable:$true] %s28_s25 }
   0x4   :  { %23 = dma.hbm_to_vmem [thread:$0]  %s19_s20, 64, %s21_s22, [#allocation3]  }
   0x5   :  { %s252_s26 = smov [#allocation5]   ;;  %s253_s28 = smov 128  }
   0x6   :  { %s30_s27 = sshll.u32 %s252_s26, 4  ;;  %s254_s29 = smov 8   ;;  %s31_s27 = int_to_ptr.vmem [resolvable:$true] %s30_s27 }
   0x7   :  { %36 = dma.hbm_to_vmem [thread:$0]  %s29_s25, 2048, %s31_s27, [#allocation6], %s253_s28, %s253_s28, %s254_s29  }
   0x8   :  { %245 = dma.done.wait [#allocation3], 64  }
   0x9   :  { %246 = vsyncadd [#allocation3], 4294967232 }
   0xa   :  { %247 = dma.done.wait [#allocation6], 2048  }
   0xb   :  { %248 = vsyncadd [#allocation6], 4294965248  ;;  %v68_v0 = vld [vmem:[#allocation5 + $0x78] sm:$0xff]  ;;  %v67_v1 = vld [vmem:[#allocation5 + $0x70] sm:$0xff]  ;;  %v255_v19 = vmov 0   ;;  %vm121_vm0 = vcmask 64512  }
   0xc   :  { %73 = vmatpush.msra.mxu0 %v68_v0  ;;  %v66_v2 = vld [vmem:[#allocation5 + $0x68] sm:$0xff]  ;;  %v65_v3 = vld [vmem:[#allocation5 + $0x60] sm:$0xff]  ;;  %v64_v4 = vld [vmem:[#allocation5 + $0x58] sm:$0xff]  ;;  %167 = vset.pattern.permute.xlu0 %v255_v19  ;;  %s150_s10 = sshll.u32 %s313_s5, 4  ;;  %s151_s10 = int_to_ptr.hbm [resolvable:$true] %s150_s10 }
   0xd   :  { %v63_v5 = vld [vmem:[#allocation5 + $0x50] sm:$0xff]  ;;  %v62_v6 = vld [vmem:[#allocation5 + $0x48] sm:$0xff]  ;;  %v61_v7 = vld [vmem:[#allocation5 + $0x40] sm:$0xff] }
   0xe   :  { %74 = vmatpush.msra.mxu0 %v67_v1  ;;  %v60_v8 = vld [vmem:[#allocation5 + $0x38] sm:$0xff]  ;;  %v59_v9 = vld [vmem:[#allocation5 + $0x30] sm:$0xff]  ;;  %v58_v10 = vld [vmem:[#allocation5 + $0x28] sm:$0xff] }
   0xf   :  { %v57_v11 = vld [vmem:[#allocation5 + $0x20] sm:$0xff]  ;;  %v56_v12 = vld [vmem:[#allocation5 + $0x18] sm:$0xff]  ;;  %v55_v13 = vld [vmem:[#allocation5 + $0x10] sm:$0xff] }
  0x10   :  { %75 = vmatpush.msra.mxu0 %v66_v2  ;;  %v51_v14 = vld [vmem:[#allocation2] sm:$0xf]  ;;  %v54_v15 = vld [vmem:[#allocation5 + $0x8] sm:$0xff]  ;;  %v53_v16 = vld [vmem:[#allocation5] sm:$0xff] }
  0x11   :  { %v52_v17 = vunpack.c.l.bf16 %v51_v14  ;;  %v95_v18 = vld [vmem:[%s312_s4] sm:$0xff] }
  0x12   :  { %76 = vmatpush.msra.mxu0 %v65_v3  ;;  %98 = vperm.xlu0 %167, %v95_v18   ;;  %v168_v20 = vld [vmem:[%s310_s2] ss:$0 sm:$0xff]  ;;  %s256_s2 = smov [#allocation7]  }
  0x13   :  { %v94_v24 = vld [vmem:[%s311_s3] sm:$0xff]  ;;  %s148_s3 = sshll.u32 %s256_s2, 4  ;;  %s149_s3 = int_to_ptr.vmem [resolvable:$true] %s148_s3 }
  0x14   :  { %77 = vmatpush.msra.mxu0 %v64_v4 }
  0x16   :  { %78 = vmatpush.msra.mxu0 %v63_v5 }
  0x18   :  { %79 = vmatpush.msra.mxu0 %v62_v6 }
  0x1a   :  { %80 = vmatpush.msra.mxu0 %v61_v7 }
  0x1c   :  { %81 = vmatpush.msra.mxu0 %v60_v8 }
  0x1e   :  { %82 = vmatpush.msra.mxu0 %v59_v9 }
  0x20   :  { %83 = vmatpush.msra.mxu0 %v58_v10 }
  0x22   :  { %84 = vmatpush.msra.mxu0 %v57_v11 }
  0x24   :  { %85 = vmatpush.msra.mxu0 %v56_v12 }
  0x26   :  { %86 = vmatpush.msra.mxu0 %v55_v13 }
  0x28   :  { %87 = vmatpush.msra.mxu0 %v54_v15 }
  0x2a   :  { %88 = vmatpush.msra.mxu0 %v53_v16 }
  0x2b   :  { %89 = vmatmul.f32.vlgmr.msra.gmra.mxu0 %v52_v17 }
  0x84   :  { %v99_v25 = vpop.permute.xlu0 %98 }
  0xa8   :  { %v90_v21 = vpop.f32.mrf.mxu0 }
  0xa9   :  { %v91_v22 = vadd.f32 %v168_v20, %v90_v21 }
  0xab   :  { %v93_v23 = vmax.f32 %v91_v22, 0.0 }
  0xad   :  { %116 = vmatpush.xpose.msra.mxu1 %v93_v23 }
  0xb0   :  { %117 = vmatmul.f32.vlgmr.msra.gmra.mxu1 %v94_v24 }
 0x12d   :  { %v118_v26 = vpop.f32.mrf.mxu1 }
 0x12e   :  { %v119_v27 = vadd.f32 %v118_v26, %v99_v25 }
 0x130   :  { %v122_v28 = vsel %vm121_vm0, %v119_v27, -inf }
 0x131   :  { %v123_v29 = vrot.slane %v122_v28, 4 }
 0x133   :  { %v124_v30 = vmax.f32 %v122_v28, %v123_v29 }
 0x135   :  { %v125_v31 = vrot.slane %v124_v30, 2 }
 0x137   :  { %v126_v32 = vmax.f32 %v124_v30, %v125_v31 }
 0x139   :  { %v127_v33 = vrot.slane %v126_v32, 1 }
 0x13b   :  { %v128_v34 = vmax.f32 %v126_v32, %v127_v33 }
 0x13d   :  { %v129_v35 = vsub.f32 %v119_v27, %v128_v34 }
 0x13f   :  { %v130_v36 = vmul.f32 1.442695, %v129_v35 }
 0x141   :  { %169 = vpow2.f32 %v130_v36 }
 0x147   :  { %v170_v37 = vpop.eup %169 }
 0x148   :  { %v132_v38 = vsel %vm121_vm0, %v170_v37, 0.0 }
 0x149   :  { %v133_v39 = vrot.slane %v132_v38, 4 }
 0x14b   :  { %v134_v40 = vadd.f32 %v133_v39, %v132_v38 }
 0x14d   :  { %v135_v41 = vrot.slane %v134_v40, 2 }
 0x14f   :  { %v136_v42 = vadd.f32 %v135_v41, %v134_v40 }
 0x151   :  { %v137_v43 = vrot.slane %v136_v42, 1 }
 0x153   :  { %v138_v44 = vadd.f32 %v137_v43, %v136_v42 }
 0x155   :  { %171 = vlog2.f32 %v138_v44 }
 0x15b   :  { %v172_v45 = vpop.eup %171 }
 0x15c   :  { %v140_v46 = vmul.f32 0.6931472, %v172_v45 }
 0x15e   :  { %v141_v47 = vsub.f32 %v129_v35, %v140_v46 }
 0x160   :  { %142 = vst.msk [vmem:[#allocation7] sm:$0xff] %vm121_vm0, %v141_v47 }
 0x161   :  { %153 = dma.vmem_to_hbm [thread:$0]  %s149_s3, 128, %s151_s10, [#allocation4]  }
 0x162   :  { %249 = dma.done.wait [#allocation4], 128  }
 0x163   :  { %250 = vsyncadd [#allocation4], 4294967168 }
 0x164   :  { %158 = vsyncpa [#allocation3], 1 }
 0x165   :  { %159 = vsyncpa [#allocation6], 1 }
 0x166   :  { %160 = vsyncpa [#allocation4], 1 }

</bundles_post_ra>
